<compile_context>
chip_gen: v6e
topology: v6e:2x2x1
jax: 0.10.0
libtpu: 0.0.40
codegen_flags: <defaults>
</compile_context>

<pallas_src>
import functools

import jax
import jax.numpy as jnp
from jax.experimental import pallas as pl
from jax.experimental.pallas import tpu as pltpu


def _vmem_limit_bytes():
    """Generation-aware scoped-VMEM budget (~3/4 of per-core VMEM)."""
    try:
        cap = int(pltpu.get_tpu_info().vmem_capacity_bytes)
    except Exception:
        cap = 64 * 1024 * 1024  # conservative (v7x-sized) fallback
    return max(32 * 1024 * 1024, (cap * 3) // 4)


def _bn_fused_kernel(x_ref, gamma_ref, beta_ref, o_ref, *, n_valid, eps, k, c):
    # Single-block fast path: batch stats + normalize in ONE pass
    # (1 HBM read + 1 HBM write). x_ref: (R, k*C) lane-packed view.
    x = x_ref[...].astype(jnp.float32)
    s = jnp.sum(x, axis=0, keepdims=True)          # (1, k*C)
    q = jnp.sum(x * x, axis=0, keepdims=True)      # (1, k*C)
    if k > 1:
        # Reduce the k row-groups packed along the lane axis down to (1, C).
        s_c = s[:, :c]
        q_c = q[:, :c]
        for g in range(1, k):
            s_c = s_c + s[:, g * c:(g + 1) * c]
            q_c = q_c + q[:, g * c:(g + 1) * c]
    else:
        s_c, q_c = s, q
    inv_n = 1.0 / n_valid
    mean = s_c * inv_n
    var = jnp.maximum(q_c * inv_n - mean * mean, 0.0)   # biased var (BN norm)
    inv_std = jax.lax.rsqrt(var + eps)                  # EUP, essentially free
    scale = gamma_ref[...] * inv_std                    # (1, C)
    shift = beta_ref[...] - mean * scale
    if k > 1:
        scale = jnp.tile(scale, (1, k))                 # (1, k*C)
        shift = jnp.tile(shift, (1, k))
    o_ref[...] = (x * scale + shift).astype(o_ref.dtype)


def _bn_stats_kernel(x_ref, sum_ref, sq_ref, *, tile_rows, step_rows, n_rows,
                     tiles_per_part, needs_mask):
    # Pass 1: per-lane sum / sum-of-squares, f32 accumulation.
    # Grid = (P parts, tiles per part); each part owns its own accumulator row
    # so v7x megacore can run parts on separate TensorCores.
    p = pl.program_id(0)
    i = pl.program_id(1)

    @pl.when(i == 0)
    def _():
        sum_ref[...] = jnp.zeros_like(sum_ref)
        sq_ref[...] = jnp.zeros_like(sq_ref)

    row0 = (p * tiles_per_part + i) * tile_rows   # global row of tile start
    n_steps = tile_rows // step_rows

    @pl.loop(0, n_steps)
    def _(s):
        start = pl.multiple_of(s * step_rows, step_rows)
        xs = x_ref[pl.ds(start, step_rows), :].astype(jnp.float32)
        if needs_mask:
            # Zero out rows past the true end (ragged tail / phantom tiles).
            rows = row0 + start + jax.lax.broadcasted_iota(jnp.int32, xs.shape, 0)
            xs = jnp.where(rows < n_rows, xs, 0.0)
        sum_ref[...] += jnp.sum(xs, axis=0, keepdims=True)[None]
        sq_ref[...] += jnp.sum(xs * xs, axis=0, keepdims=True)[None]


def _bn_apply_kernel(x_ref, scale_ref, shift_ref, o_ref):
    # Pass 2: y = x * scale + shift (mean/var/gamma/beta already folded in).
    x = x_ref[...].astype(jnp.float32)
    o_ref[...] = (x * scale_ref[...] + shift_ref[...]).astype(o_ref.dtype)


def transpose_batch_norm(x, gamma, beta, *, eps=1e-5,
                         block_bytes=None, fused_bytes_limit=None):
    """Forward of TransposeBatchNorm (training-mode batch statistics).

    x: (B, L, C); gamma, beta: (C,) affine params of BatchNorm1d(C).
    Equivalent to x.transpose(1,2) -> BatchNorm1d -> transpose(1,2) with the
    transposes fused away (C stays lane-dense throughout).
    block_bytes / fused_bytes_limit are test-only overrides of the byte-based
    tile size / fused-path gate.
    """
    B, L, C = x.shape
    N = B * L
    itemsize = x.dtype.itemsize
    vmem_limit = _vmem_limit_bytes()

    # Lane packing: for C < 128 fold k row-groups into the lane axis so every
    # vreg and every store is lane-dense (k * C == 128 when possible).
    k = 1
    if C < 128 and 128 % C == 0:
        k = 128 // C
        while k > 1 and N % k != 0:
            k //= 2
    n_rows = N // k
    c_eff = k * C
    x2 = x.reshape(n_rows, c_eff)          # row-major contiguous: free view

    g32 = gamma.astype(jnp.float32).reshape(1, C)
    b32 = beta.astype(jnp.float32).reshape(1, C)

    x_bytes = n_rows * c_eff * itemsize
    row_bytes = c_eff * itemsize

    # ---- Fused single-pass path, gated on bytes. ----------------------------
    # Conservative accounting: double-buffered in + out plus f32 temporaries.
    fused_limit = vmem_limit if fused_bytes_limit is None else fused_bytes_limit
    if 8 * x_bytes + 4 * c_eff * 4 <= fused_limit:
        kern = functools.partial(_bn_fused_kernel, n_valid=float(N), eps=eps,
                                 k=k, c=C)
        y = pl.pallas_call(
            kern,
            out_shape=jax.ShapeDtypeStruct((n_rows, c_eff), x.dtype),
            grid_spec=pltpu.PrefetchScalarGridSpec(
                num_scalar_prefetch=0,
                grid=(1,),
                in_specs=[
                    pl.BlockSpec((n_rows, c_eff), lambda i: (0, 0)),
                    pl.BlockSpec((1, C), lambda i: (0, 0)),
                    pl.BlockSpec((1, C), lambda i: (0, 0)),
                ],
                out_specs=pl.BlockSpec((n_rows, c_eff), lambda i: (0, 0)),
            ),
            compiler_params=pltpu.CompilerParams(
                dimension_semantics=("arbitrary",),
                vmem_limit_bytes=vmem_limit),
            cost_estimate=pl.CostEstimate(
                flops=5 * N * C, transcendentals=C,
                bytes_accessed=2 * N * C * itemsize + 2 * C * 4),
        )(x2, g32, b32)
        return y.reshape(B, L, C)

    # ---- Tiled two-pass path. ------------------------------------------------
    granule = max(8, 32 // itemsize)        # sublane granule: 8 f32, 16 bf16, 32 i8
    target = min(4 * 1024 * 1024, vmem_limit // 8)   # per-x-block byte budget
    if block_bytes is not None:
        target = block_bytes
    step_target = min(256 * 1024, target)   # in-kernel reduction chunk budget
    step_rows = max(granule, (step_target // row_bytes) // granule * granule)
    n_steps = max(1, target // (step_rows * row_bytes))
    n_steps = min(n_steps, pl.cdiv(n_rows, step_rows))
    tr = n_steps * step_rows
    num_tiles = pl.cdiv(n_rows, tr)

    # Megacore: P independent partial accumulators (one per TC on v7x).
    P = 2 if num_tiles >= 2 else 1
    tiles_per_part = pl.cdiv(num_tiles, P)
    needs_mask = (P * tiles_per_part * tr) != n_rows

    stats_kern = functools.partial(
        _bn_stats_kernel, tile_rows=tr, step_rows=step_rows, n_rows=n_rows,
        tiles_per_part=tiles_per_part, needs_mask=needs_mask)

    # Clamp phantom tiles (uneven part split) to the last real tile so the DMA
    # stays in bounds; their rows are masked to zero inside the kernel.
    x_stats_map = lambda p, i: (jnp.minimum(p * tiles_per_part + i,
                                            num_tiles - 1), 0)

    sums, sqs = pl.pallas_call(
        stats_kern,
        out_shape=(jax.ShapeDtypeStruct((P, 1, c_eff), jnp.float32),
                   jax.ShapeDtypeStruct((P, 1, c_eff), jnp.float32)),
        grid_spec=pltpu.PrefetchScalarGridSpec(
            num_scalar_prefetch=0,
            grid=(P, tiles_per_part),
            in_specs=[pl.BlockSpec((tr, c_eff), x_stats_map)],
            out_specs=[pl.BlockSpec((1, 1, c_eff), lambda p, i: (p, 0, 0)),
                       pl.BlockSpec((1, 1, c_eff), lambda p, i: (p, 0, 0))],
        ),
        compiler_params=pltpu.CompilerParams(
            dimension_semantics=("parallel", "arbitrary"),
            vmem_limit_bytes=vmem_limit),
        cost_estimate=pl.CostEstimate(
            flops=3 * N * C, transcendentals=0,
            bytes_accessed=N * C * itemsize + 2 * P * c_eff * 4),
    )(x2)

    # Tiny (C,)-sized epilogue in plain JAX: combine partial sums and fold
    # mean/var/gamma/beta into a single scale & shift so pass 2 is a pure FMA.
    s = sums.reshape(P * k, C).sum(axis=0)
    q = sqs.reshape(P * k, C).sum(axis=0)
    inv_n = 1.0 / float(N)
    mean = s * inv_n
    var = jnp.maximum(q * inv_n - mean * mean, 0.0)     # biased var (BN norm)
    inv_std = jax.lax.rsqrt(var + eps)
    scale_c = gamma.astype(jnp.float32) * inv_std       # (C,)
    shift_c = beta.astype(jnp.float32) - mean * scale_c
    scale = jnp.tile(scale_c, k).reshape(1, c_eff)
    shift = jnp.tile(shift_c, k).reshape(1, c_eff)

    # ---- Pass 2: y = x * scale + shift (independent row tiles -> parallel). -
    y = pl.pallas_call(
        _bn_apply_kernel,
        out_shape=jax.ShapeDtypeStruct((n_rows, c_eff), x.dtype),
        grid_spec=pltpu.PrefetchScalarGridSpec(
            num_scalar_prefetch=0,
            grid=(num_tiles,),
            in_specs=[
                pl.BlockSpec((tr, c_eff), lambda i: (i, 0)),
                pl.BlockSpec((1, c_eff), lambda i: (0, 0)),
                pl.BlockSpec((1, c_eff), lambda i: (0, 0)),
            ],
            out_specs=pl.BlockSpec((tr, c_eff), lambda i: (i, 0)),
        ),
        compiler_params=pltpu.CompilerParams(
            dimension_semantics=("parallel",),
            vmem_limit_bytes=vmem_limit),
        cost_estimate=pl.CostEstimate(
            flops=2 * N * C, transcendentals=0,
            bytes_accessed=2 * N * C * itemsize + 2 * c_eff * 4),
    )(x2, scale, shift)

    return y.reshape(B, L, C)


def _ref_transpose_batch_norm(x, gamma, beta, eps=1e-5):
    # Pure-JAX reference: transpose -> BatchNorm1d (training) -> transpose,
    # i.e. per-channel stats over (B, L) with biased variance.
    mean = jnp.mean(x, axis=(0, 1))
    var = jnp.mean(jnp.square(x - mean), axis=(0, 1))
    return (x - mean) * jax.lax.rsqrt(var + eps) * gamma + beta


if __name__ == "__main__":
    key = jax.random.PRNGKey(0)

    # --- Main case: TransposeBatchNorm(32) on a (batch=2, seq=16, hidden=32)
    #     input. Takes the fused single-pass, lane-packed path.
    B, L, C = 2, 16, 32
    kx, kg, kb = jax.random.split(key, 3)
    x = jax.random.normal(kx, (B, L, C), jnp.float32)
    gamma = 1.0 + 0.1 * jax.random.normal(kg, (C,), jnp.float32)
    beta = 0.1 * jax.random.normal(kb, (C,), jnp.float32)

    ref = _ref_transpose_batch_norm(x, gamma, beta)
    out = jax.block_until_ready(transpose_batch_norm(x, gamma, beta))
    assert out.shape == (B, L, C)
    assert jnp.allclose(out, ref, atol=2e-5, rtol=2e-5)

    # --- Force the tiled two-pass path (small block budget, fused gate off).
    out_tiled = jax.block_until_ready(
        transpose_batch_norm(x, gamma, beta, block_bytes=4096,
                             fused_bytes_limit=0))
    assert jnp.allclose(out_tiled, ref, atol=2e-5, rtol=2e-5)

    # --- Ragged / multi-tile case: N = 3*85 = 255 rows (odd -> no lane
    #     packing), 4 row tiles split over P=2 accumulator parts with an
    #     in-kernel tail mask (no jnp.pad copy).
    B2, L2 = 3, 85
    x2 = jax.random.normal(jax.random.PRNGKey(1), (B2, L2, C), jnp.float32)
    ref2 = _ref_transpose_batch_norm(x2, gamma, beta)
    out2 = jax.block_until_ready(
        transpose_batch_norm(x2, gamma, beta, block_bytes=8192,
                             fused_bytes_limit=0))
    assert out2.shape == (B2, L2, C)
    assert jnp.allclose(out2, ref2, atol=2e-5, rtol=2e-5)

    print("KERNEL_OK")
</pallas_src>

<mosaic_0001>
module attributes {stable_mosaic.version = 11 : i64} {
  func.func @_bn_fused_kernel(%arg0: i32, %arg1: memref<8x128xf32, #tpu.memory_space<vmem>>, %arg2: memref<1x32xf32, #tpu.memory_space<vmem>>, %arg3: memref<1x32xf32, #tpu.memory_space<vmem>>, %arg4: memref<8x128xf32, #tpu.memory_space<vmem>>) attributes {dimension_semantics = [#tpu.dimension_semantics<arbitrary>], iteration_bounds = array<i64: 1>, scalar_prefetch = 0 : i64, scratch_operands = 0 : i64, tpu.core_type = #tpu.core_type<tc>, window_params = [{pipeline_mode = #tpu.pipeline_mode<synchronous>, transform_indices = @transform_0, window_bounds = array<i64: 8, 128>}, {pipeline_mode = #tpu.pipeline_mode<synchronous>, transform_indices = @transform_1, window_bounds = array<i64: 1, 32>}, {pipeline_mode = #tpu.pipeline_mode<synchronous>, transform_indices = @transform_2, window_bounds = array<i64: 1, 32>}, {pipeline_mode = #tpu.pipeline_mode<synchronous>, transform_indices = @transform_3, window_bounds = array<i64: 8, 128>}]} {
    %c0 = arith.constant 0 : index
    %c0_0 = arith.constant 0 : index
    %0 = vector.load %arg1[%c0, %c0_0] : memref<8x128xf32, #tpu.memory_space<vmem>>, vector<8x128xf32>
    %cst = arith.constant dense<0.000000e+00> : vector<128xf32>
    %1 = vector.multi_reduction <add>, %0, %cst [0] : vector<8x128xf32> to vector<128xf32>
    %2 = vector.shape_cast %1 : vector<128xf32> to vector<1x128xf32>
    %3 = arith.mulf %0, %0 : vector<8x128xf32>
    %cst_1 = arith.constant dense<0.000000e+00> : vector<128xf32>
    %4 = vector.multi_reduction <add>, %3, %cst_1 [0] : vector<8x128xf32> to vector<128xf32>
    %5 = vector.shape_cast %4 : vector<128xf32> to vector<1x128xf32>
    %6 = vector.extract_strided_slice %2 {offsets = [0, 0], sizes = [1, 32], strides = [1, 1]} : vector<1x128xf32> to vector<1x32xf32>
    %7 = vector.extract_strided_slice %5 {offsets = [0, 0], sizes = [1, 32], strides = [1, 1]} : vector<1x128xf32> to vector<1x32xf32>
    %8 = vector.extract_strided_slice %2 {offsets = [0, 32], sizes = [1, 32], strides = [1, 1]} : vector<1x128xf32> to vector<1x32xf32>
    %9 = arith.addf %6, %8 : vector<1x32xf32>
    %10 = vector.extract_strided_slice %5 {offsets = [0, 32], sizes = [1, 32], strides = [1, 1]} : vector<1x128xf32> to vector<1x32xf32>
    %11 = arith.addf %7, %10 : vector<1x32xf32>
    %12 = vector.extract_strided_slice %2 {offsets = [0, 64], sizes = [1, 32], strides = [1, 1]} : vector<1x128xf32> to vector<1x32xf32>
    %13 = arith.addf %9, %12 : vector<1x32xf32>
    %14 = vector.extract_strided_slice %5 {offsets = [0, 64], sizes = [1, 32], strides = [1, 1]} : vector<1x128xf32> to vector<1x32xf32>
    %15 = arith.addf %11, %14 : vector<1x32xf32>
    %16 = vector.extract_strided_slice %2 {offsets = [0, 96], sizes = [1, 32], strides = [1, 1]} : vector<1x128xf32> to vector<1x32xf32>
    %17 = arith.addf %13, %16 : vector<1x32xf32>
    %18 = vector.extract_strided_slice %5 {offsets = [0, 96], sizes = [1, 32], strides = [1, 1]} : vector<1x128xf32> to vector<1x32xf32>
    %19 = arith.addf %15, %18 : vector<1x32xf32>
    %cst_2 = arith.constant 3.125000e-02 : f32
    %20 = vector.broadcast %cst_2 : f32 to vector<1x32xf32>
    %21 = arith.mulf %17, %20 : vector<1x32xf32>
    %cst_3 = arith.constant 3.125000e-02 : f32
    %22 = vector.broadcast %cst_3 : f32 to vector<1x32xf32>
    %23 = arith.mulf %19, %22 : vector<1x32xf32>
    %24 = arith.mulf %21, %21 : vector<1x32xf32>
    %25 = arith.subf %23, %24 : vector<1x32xf32>
    %cst_4 = arith.constant 0.000000e+00 : f32
    %26 = vector.broadcast %cst_4 : f32 to vector<1x32xf32>
    %27 = arith.maximumf %25, %26 : vector<1x32xf32>
    %cst_5 = arith.constant 9.99999974E-6 : f32
    %28 = vector.broadcast %cst_5 : f32 to vector<1x32xf32>
    %29 = arith.addf %27, %28 : vector<1x32xf32>
    %30 = math.rsqrt %29 : vector<1x32xf32>
    %c0_6 = arith.constant 0 : index
    %c0_7 = arith.constant 0 : index
    %31 = vector.load %arg2[%c0_6, %c0_7] : memref<1x32xf32, #tpu.memory_space<vmem>>, vector<1x32xf32>
    %32 = arith.mulf %31, %30 : vector<1x32xf32>
    %c0_8 = arith.constant 0 : index
    %c0_9 = arith.constant 0 : index
    %33 = vector.load %arg3[%c0_8, %c0_9] : memref<1x32xf32, #tpu.memory_space<vmem>>, vector<1x32xf32>
    %34 = arith.mulf %21, %32 : vector<1x32xf32>
    %35 = arith.subf %33, %34 : vector<1x32xf32>
    %36 = tpu.concatenate %32, %32, %32, %32 in 1 : vector<1x32xf32>, vector<1x32xf32>, vector<1x32xf32>, vector<1x32xf32> -> vector<1x128xf32>
    %37 = tpu.concatenate %35, %35, %35, %35 in 1 : vector<1x32xf32>, vector<1x32xf32>, vector<1x32xf32>, vector<1x32xf32> -> vector<1x128xf32>
    %38 = vector.broadcast %36 : vector<1x128xf32> to vector<8x128xf32>
    %39 = arith.mulf %0, %38 : vector<8x128xf32>
    %40 = vector.broadcast %37 : vector<1x128xf32> to vector<8x128xf32>
    %41 = arith.addf %39, %40 : vector<8x128xf32>
    %c0_10 = arith.constant 0 : index
    %c0_11 = arith.constant 0 : index
    %42 = vector.load %arg4[%c0_10, %c0_11] : memref<8x128xf32, #tpu.memory_space<vmem>>, vector<8x128xf32>
    tpu.vector_store %arg4[%c0_10, %c0_11], %41 {strides = array<i32>} : memref<8x128xf32, #tpu.memory_space<vmem>>, vector<8x128xf32>,
    return
  }
  func.func @transform_0(%arg0: i32) -> (i32, i32) {
    %c0_i32 = arith.constant 0 : i32
    %c0_i32_0 = arith.constant 0 : i32
    %c0_i32_1 = arith.constant 0 : i32
    return %c0_i32, %c0_i32_0 : i32, i32
  }
  func.func @transform_1(%arg0: i32) -> (i32, i32) {
    %c0_i32 = arith.constant 0 : i32
    %c0_i32_0 = arith.constant 0 : i32
    %c0_i32_1 = arith.constant 0 : i32
    return %c0_i32, %c0_i32_0 : i32, i32
  }
  func.func @transform_2(%arg0: i32) -> (i32, i32) {
    %c0_i32 = arith.constant 0 : i32
    %c0_i32_0 = arith.constant 0 : i32
    %c0_i32_1 = arith.constant 0 : i32
    return %c0_i32, %c0_i32_0 : i32, i32
  }
  func.func @transform_3(%arg0: i32) -> (i32, i32) {
    %c0_i32 = arith.constant 0 : i32
    %c0_i32_0 = arith.constant 0 : i32
    %c0_i32_1 = arith.constant 0 : i32
    return %c0_i32, %c0_i32_0 : i32, i32
  }
}

</mosaic_0001>

<bundles_post_ra>
// kernel: tpu_custom_call.1
= control target key start
LH: loop header
LB: loop body
LE: loop exit
PB: predicated region body
PF: predicated region fallthrough
CT: control target
= control target key end

     0   :  { %8 = vsyncpa [#allocation3], 0  ;;  %s249_s0 = inlined_call_operand.hbm [shape: f32[8,128], index: 0, kind: input, shape index: {}]   ;;  %s250_s1 = inlined_call_operand.vmem [shape: f32[1,32], index: 1, kind: input, shape index: {}]   ;;  %s251_s2 = inlined_call_operand.vmem [shape: f32[1,32], index: 2, kind: input, shape index: {}]   ;;  %s252_s3 = inlined_call_operand.hbm [shape: f32[8,128], index: 3, kind: output, shape index: {}]  }
   0x1   :  { %9 = vsyncpa [#allocation4], 0  ;;  %s193_s12 = smov [#allocation2]  }
   0x2   :  { %s16_s13 = sshll.u32 %s193_s12, 4  ;;  %s17_s13 = int_to_ptr.vmem [resolvable:$true] %s16_s13 }
   0x3   :  { %s157_s14 = scalar_lea.vmem %s17_s13, 128  ;;  %p162_p1 = scmp.lt.s32.totalorder %s17_s13, %s17_s13 }
   0x4   :  { %p158_p0 = scmp.ne.s32.totalorder %s17_s13, %s157_s14  ;;  %p163_p2 = scmp.lt.s32.totalorder %s157_s14, %s157_s14 }
   0x6   :  { %p164_p3 = por %p163_p2, %p162_p1 }
   0x8   :  { %p165_p4 = pnand %p164_p3, %p158_p0 }
   0xa   :  { %168 = shalt.err (!%p165_p4)
}
   0xb   :  { %19 = dma.hbm_to_vmem [thread:$0]  %s249_s0, 128, %s17_s13, [#allocation3]  }
   0xc   :  { %189 = dma.done.wait [#allocation3], 128  }
   0xd   :  { %190 = vsyncadd [#allocation3], 4294967168  ;;  %v221_v0 = vld [vmem:[#allocation2] sm:$0xff]  ;;  %s194_s0 = smov 64   ;;  %s195_s17 = smov 96   ;;  %v80_v32 = vlaneseq  ;;  %vm93_vm0 = vcmask 261120  }
   0xe   :  { %v28_v1 = vrot.slane %v221_v0, 4  ;;  %v34_v2 = vmul.f32 %v221_v0, %v221_v0  ;;  %s196_s18 = smov 32   ;;  %v74_v34 = vld [vmem:[%s250_s1] sm:$0x1]  ;;  %vm95_vm1 = vcmask 523264   ;;  %vm97_vm2 = vcmask 785408  }
   0xf   :  { %v81_v33 = vshrl.u32 %v80_v32, 7  ;;  %v76_v38 = vld [vmem:[%s251_s2] sm:$0x1]  ;;  %s197_s1 = smov [#allocation5]  }
  0x10   :  { %v29_v3 = vadd.f32 %v28_v1, %v221_v0  ;;  %v35_v4 = vrot.slane %v34_v2, 4  ;;  %s133_s2 = sshll.u32 %s197_s1, 4  ;;  %s134_s2 = int_to_ptr.vmem [resolvable:$true] %s133_s2 }
  0x11   :  { %v82_v35 = vsub.s32 0, %v81_v33  ;;  %s169_s23 = scalar_lea.vmem %s134_s2, 128  ;;  %p174_p6 = scmp.lt.s32.totalorder %s134_s2, %s134_s2 }
  0x12   :  { %v30_v5 = vrot.slane %v29_v3, 2  ;;  %v36_v6 = vadd.f32 %v35_v4, %v34_v2  ;;  %p170_p5 = scmp.ne.s32.totalorder %s134_s2, %s169_s23  ;;  %p175_p7 = scmp.lt.s32.totalorder %s169_s23, %s169_s23 }
  0x14   :  { %v31_v7 = vadd.f32 %v30_v5, %v29_v3  ;;  %v37_v8 = vrot.slane %v36_v6, 2  ;;  %p176_p8 = por %p175_p7, %p174_p6 }
  0x16   :  { %v32_v9 = vrot.slane %v31_v7, 1  ;;  %v38_v10 = vadd.f32 %v37_v8, %v36_v6  ;;  %p177_p9 = pnand %p176_p8, %p170_p5 }
  0x18   :  { %v33_v11 = vadd.f32 %v32_v9, %v31_v7  ;;  %v39_v12 = vrot.slane %v38_v10, 1 }
  0x1a   :  { %51 = vrot.lane.b32.xlu1 %v33_v11, %s194_s0  ;;  %42 = vrot.lane.b32.xlu0 %v33_v11, %s195_s17  ;;  %v40_v13 = vadd.f32 %v39_v12, %v38_v10 }
  0x1e   :  { %55 = vrot.lane.b32.xlu1 %v40_v13, %s194_s0  ;;  %47 = vrot.lane.b32.xlu0 %v40_v13, %s195_s17 }
  0x22   :  { %63 = vrot.lane.b32.xlu1 %v40_v13, %s196_s18  ;;  %59 = vrot.lane.b32.xlu0 %v33_v11, %s196_s18 }
  0x8c   :  { %v52_v14 = vpop.permute.xlu1 %51  ;;  %v43_v15 = vpop.permute.xlu0 %42 }
  0x8d   :  { %v45_v16 = vadd.f32 %v43_v15, %v33_v11 }
  0x8f   :  { %v54_v21 = vadd.f32 %v52_v14, %v45_v16 }
  0x90   :  { %v56_v17 = vpop.permute.xlu1 %55  ;;  %v48_v18 = vpop.permute.xlu0 %47 }
  0x91   :  { %v50_v19 = vadd.f32 %v48_v18, %v40_v13 }
  0x93   :  { %v58_v20 = vadd.f32 %v56_v17, %v50_v19 }
  0x94   :  { %v64_v22 = vpop.permute.xlu1 %63  ;;  %v60_v23 = vpop.permute.xlu0 %59 }
  0x95   :  { %v66_v24 = vadd.f32 %v64_v22, %v58_v20  ;;  %v62_v25 = vadd.f32 %v60_v23, %v54_v21 }
  0x97   :  { %v67_v26 = vmul.f32 0.03125, %v62_v25  ;;  %v68_v27 = vmul.f32 0.03125, %v66_v24 }
  0x99   :  { %v69_v28 = vmul.f32 %v67_v26, %v67_v26 }
  0x9b   :  { %v70_v29 = vsub.f32 %v68_v27, %v69_v28 }
  0x9d   :  { %v71_v30 = vmax.f32 %v70_v29, 0.0 }
  0x9f   :  { %v72_v31 = vadd.f32 1e-05, %v71_v30 }
  0xa1   :  { %147 = vrsqrt.f32 %v72_v31 }
  0xae   :  { %v148_v36 = vpop.eup %147 }
  0xaf   :  { %v75_v37 = vmul.f32 %v148_v36, %v74_v34 }
  0xb1   :  { %v77_v39 = vmul.f32 %v75_v37, %v67_v26  ;;  %v83_v40 = vrot.slane %v75_v37, %v82_v35 }
  0xb3   :  { %v78_v41 = vsub.f32 %v76_v38, %v77_v39  ;;  %87 = vrot.lane.b32.xlu1 %v83_v40, %s194_s0  ;;  %84 = vrot.lane.b32.xlu0 %v83_v40, %s196_s18 }
  0xb5   :  { %v103_v42 = vrot.slane %v78_v41, %v82_v35 }
  0xb7   :  { %90 = vrot.lane.b32.xlu0 %v83_v40, %s195_s17  ;;  %104 = vrot.lane.b32.xlu1 %v103_v42, %s196_s18 }
  0xbb   :  { %107 = vrot.lane.b32.xlu0 %v103_v42, %s194_s0  ;;  %110 = vrot.lane.b32.xlu1 %v103_v42, %s195_s17 }
 0x125   :  { %v88_v43 = vpop.permute.xlu1 %87  ;;  %v85_v44 = vpop.permute.xlu0 %84 }
 0x126   :  { %v94_v45 = vsel %vm93_vm0, %v75_v37, %v85_v44 }
 0x127   :  { %v96_v46 = vsel %vm95_vm1, %v94_v45, %v88_v43 }
 0x129   :  { %v91_v47 = vpop.permute.xlu0 %90  ;;  %v105_v48 = vpop.permute.xlu1 %104 }
 0x12a   :  { %v98_v49 = vsel %vm97_vm2, %v96_v46, %v91_v47  ;;  %v113_v51 = vsel %vm93_vm0, %v78_v41, %v105_v48 }
 0x12b   :  { %v119_v50 = vrot.slane %v98_v49, %v82_v35 }
 0x12d   :  { %v108_v52 = vpop.permute.xlu0 %107  ;;  %v111_v53 = vpop.permute.xlu1 %110  ;;  %v120_v56 = vmul.f32 %v119_v50, %v221_v0 }
 0x12e   :  { %v114_v54 = vsel %vm95_vm1, %v113_v51, %v108_v52 }
 0x12f   :  { %v115_v55 = vsel %vm97_vm2, %v114_v54, %v111_v53 }
 0x130   :  { %v124_v57 = vrot.slane %v115_v55, %v82_v35 }
 0x132   :  { %v125_v58 = vadd.f32 %v124_v57, %v120_v56 }
 0x134   :  { %126 = vst [vmem:[#allocation5] sm:$0xff] %v125_v58 }
 0x135   :  { %180 = shalt.err (!%p177_p9)
}
 0x136   :  { %136 = dma.vmem_to_hbm [thread:$0]  %s134_s2, 128, %s252_s3, [#allocation4]  }
 0x137   :  { %191 = dma.done.wait [#allocation4], 128  }
 0x138   :  { %192 = vsyncadd [#allocation4], 4294967168 }
 0x139   :  { %140 = vsyncpa [#allocation3], 1 }
 0x13a   :  { %141 = vsyncpa [#allocation4], 1 }

</bundles_post_ra>
